<compile_context>
chip_gen: v6e
topology: v6e:2x2x1
jax: 0.10.0
libtpu: 0.0.40
codegen_flags: <defaults>
</compile_context>

<pallas_src>
import functools

import jax
import jax.numpy as jnp
from jax import lax
from jax.experimental import pallas as pl
from jax.experimental.pallas import tpu as pltpu

LANE = 128
CHUNK = 32      # timesteps per grid step of the recurrence kernel (divides TM)
TM = 128        # row tile of the parallel matmul kernels
TN = 512        # col tile of the parallel matmul kernels


def _round_up(x, m):
    return ((x + m - 1) // m) * m


def _vmem_limit(block_bytes):
    # double-buffered blocks + headroom for semaphores / internal scratch,
    # capped under v7x's 64 MiB physical VMEM.
    return int(min(2 * block_bytes + (8 << 20), 64 << 20))


# ---------------- shared kernel: tiled matmul + bias (parallel) --------------
# Used for both the input projection (embeds @ Wih^T + b) and hidden2score
# (hs @ Wout^T + bout).  Full K per tile (no reduction axis, no accumulator).
# TODO(synk): K-tile (grid axis + accumulator) only if K*TN f32 outgrows VMEM.

def matmul_bias_kernel(x_ref, w_ref, b_ref, out_ref):
    out_ref[...] = (jnp.dot(x_ref[...], w_ref[...],
                            preferred_element_type=jnp.float32)
                    + b_ref[...]).astype(out_ref.dtype)


def _matmul_bias(x, w, b):
    """out[M, N] = x[M, K] @ w[K, N] + b[1, N]; requires M % TM == N % TN == 0."""
    M, K = x.shape
    N = w.shape[1]
    blk = 4 * (TM * K + K * TN + TN + TM * TN)
    return pl.pallas_call(
        matmul_bias_kernel,
        out_shape=jax.ShapeDtypeStruct((M, N), jnp.float32),
        grid_spec=pltpu.PrefetchScalarGridSpec(
            num_scalar_prefetch=0,
            grid=(M // TM, N // TN),
            in_specs=[
                pl.BlockSpec((TM, K), lambda i, j: (i, 0)),
                pl.BlockSpec((K, TN), lambda i, j: (0, j)),
                pl.BlockSpec((1, TN), lambda i, j: (0, j)),
            ],
            out_specs=pl.BlockSpec((TM, TN), lambda i, j: (i, j)),
        ),
        compiler_params=pltpu.CompilerParams(
            dimension_semantics=("parallel", "parallel"),
            vmem_limit_bytes=_vmem_limit(blk)),
    )(x, w, b)


# --------------------------- kernel: LSTM recurrence -------------------------

def lstm_recurrence_kernel(xg_ref, whh_t_ref, hs_ref, h_ref, c_ref,
                           *, hidden_p, chunk):
    Hp = hidden_p

    @pl.when(pl.program_id(0) == 0)
    def _():
        h_ref[...] = jnp.zeros_like(h_ref)
        c_ref[...] = jnp.zeros_like(c_ref)

    h = h_ref[...]
    c = c_ref[...]

    # Fully unrolled inner loop: cross-step scheduler visibility on the
    # latency-bound [1, Hp] chain.  Whh^T is read from the ref inside each
    # step's dot (not hoisted as a value) to avoid pinning the whole tile in
    # vregs across the chunk.
    for s in range(chunk):
        gates = xg_ref[pl.ds(s, 1), :] + jnp.dot(
            h, whh_t_ref[...], preferred_element_type=jnp.float32)
        # PyTorch gate order i, f, g, o — each a whole-vreg (128-lane) slice.
        i = jax.nn.sigmoid(gates[:, 0 * Hp:1 * Hp])
        f = jax.nn.sigmoid(gates[:, 1 * Hp:2 * Hp])
        g = jnp.tanh(gates[:, 2 * Hp:3 * Hp])
        o = jax.nn.sigmoid(gates[:, 3 * Hp:4 * Hp])
        c = f * c + i * g
        h = o * jnp.tanh(c)
        # Per-step row store into the output block (store slot has slack here);
        # avoids an XLU concat of `chunk` single-sublane vregs.
        hs_ref[pl.ds(s, 1), :] = h

    h_ref[...] = h
    c_ref[...] = c


# --------------------------------- wrapper -----------------------------------

def lstm_lm_forward(sentence, params):
    emb_table = params["embedding"]                         # [V, E]
    Wih, Whh = params["weight_ih"], params["weight_hh"]     # [4H, E], [4H, H]
    b_ih, b_hh = params["bias_ih"], params["bias_hh"]       # [4H]
    Wout, bout = params["weight_out"], params["bias_out"]   # [V, H], [V]

    T = sentence.shape[0]
    E = emb_table.shape[1]
    H = Whh.shape[1]
    V = Wout.shape[0]

    Ep = _round_up(E, LANE)
    Hp = _round_up(H, LANE)
    Vp = _round_up(V, TN)          # lane-dense and divisible by tn=512
    Tp = _round_up(T, TM)          # divisible by tm=128 and by CHUNK (32 | 128)

    # Gate-wise zero-padding of the stacked (i,f,g,o) parameters so each gate
    # occupies its own Hp-lane block; zero rows/cols keep padded h/c lanes 0.
    def pad_gate_rows(w):  # [4H, ...] -> [4Hp, ...]
        parts = [w[g * H:(g + 1) * H] for g in range(4)]
        pads = [(0, Hp - H)] + [(0, 0)] * (w.ndim - 1)
        return jnp.concatenate([jnp.pad(p, pads) for p in parts], axis=0)

    wih_t = jnp.pad(pad_gate_rows(Wih), ((0, 0), (0, Ep - E))).T     # [Ep, 4Hp]
    whh_t = jnp.pad(pad_gate_rows(Whh), ((0, 0), (0, Hp - H))).T     # [Hp, 4Hp]
    b_p = pad_gate_rows(b_ih + b_hh)[None, :]                        # [1, 4Hp]

    wout_t = jnp.pad(Wout, ((0, Vp - V), (0, Hp - H))).T             # [Hp, Vp]
    bout_p = jnp.pad(bout, (0, Vp - V))[None, :]                     # [1, Vp]

    # Embedding lookup (plain-JAX glue), lane-padded, time padded to Tp
    # (trailing padded timesteps are zero and get sliced off at the end).
    emb_p = jnp.pad(emb_table, ((0, 0), (0, Ep - E)))                # [V, Ep]
    embeds = jnp.take(emb_p, sentence, axis=0)                       # [T, Ep]
    embeds = jnp.pad(embeds, ((0, Tp - T), (0, 0)))                  # [Tp, Ep]

    # Kernel A: hoisted input projection for the whole sequence (parallel,
    # full-M MXU utilization) — off the serial critical path.
    xg = _matmul_bias(embeds, wih_t, b_p)                            # [Tp, 4Hp]

    # Kernel B: the sequential LSTM recurrence over CHUNK-step grid iterations.
    rec_kernel = functools.partial(lstm_recurrence_kernel,
                                   hidden_p=Hp, chunk=CHUNK)
    rec_blk = 4 * (CHUNK * 4 * Hp + Hp * 4 * Hp + CHUNK * Hp + 2 * Hp)
    hs = pl.pallas_call(
        rec_kernel,
        out_shape=jax.ShapeDtypeStruct((Tp, Hp), jnp.float32),
        grid_spec=pltpu.PrefetchScalarGridSpec(
            num_scalar_prefetch=0,
            grid=(Tp // CHUNK,),
            in_specs=[
                pl.BlockSpec((CHUNK, 4 * Hp), lambda t: (t, 0)),     # xg chunk
                pl.BlockSpec((Hp, 4 * Hp), lambda t: (0, 0)),        # Whh^T (resident)
            ],
            out_specs=pl.BlockSpec((CHUNK, Hp), lambda t: (t, 0)),
            scratch_shapes=[
                pltpu.VMEM((1, Hp), jnp.float32),                    # h carry
                pltpu.VMEM((1, Hp), jnp.float32),                    # c carry
            ],
        ),
        compiler_params=pltpu.CompilerParams(
            dimension_semantics=("arbitrary",),                      # serial in time
            vmem_limit_bytes=_vmem_limit(rec_blk)),
    )(xg, whh_t)

    # Kernel C: hidden2score projection as a pure 2-D parallel tiled matmul.
    scores_p = _matmul_bias(hs, wout_t, bout_p)                      # [Tp, Vp]

    return scores_p[:T, :V]


# ------------------------------ pure-JAX ref ----------------------------------

def lstm_lm_reference(sentence, params):
    """Pure-JAX reference matching PyTorch nn.LSTM / nn.Linear semantics."""
    emb = jnp.take(params["embedding"], sentence, axis=0)
    Wih, Whh = params["weight_ih"], params["weight_hh"]
    b_ih, b_hh = params["bias_ih"], params["bias_hh"]
    Wout, bout = params["weight_out"], params["bias_out"]
    H = Whh.shape[1]

    def step(carry, x):
        h, c = carry
        gates = x @ Wih.T + b_ih + h @ Whh.T + b_hh
        i = jax.nn.sigmoid(gates[0:H])
        f = jax.nn.sigmoid(gates[H:2 * H])
        g = jnp.tanh(gates[2 * H:3 * H])
        o = jax.nn.sigmoid(gates[3 * H:4 * H])
        c = f * c + i * g
        h = o * jnp.tanh(c)
        return (h, c), h

    init = (jnp.zeros((H,), jnp.float32), jnp.zeros((H,), jnp.float32))
    _, hs = lax.scan(step, init, emb)
    return hs @ Wout.T + bout


def make_params(key, embedding_dim, hidden_dim, vocab_size):
    k = 1.0 / jnp.sqrt(jnp.float32(hidden_dim))
    keys = jax.random.split(key, 7)
    return {
        "embedding": jax.random.normal(keys[0], (vocab_size, embedding_dim),
                                       jnp.float32),
        "weight_ih": jax.random.uniform(keys[1], (4 * hidden_dim, embedding_dim),
                                        jnp.float32, -k, k),
        "weight_hh": jax.random.uniform(keys[2], (4 * hidden_dim, hidden_dim),
                                        jnp.float32, -k, k),
        "bias_ih": jax.random.uniform(keys[3], (4 * hidden_dim,),
                                      jnp.float32, -k, k),
        "bias_hh": jax.random.uniform(keys[4], (4 * hidden_dim,),
                                      jnp.float32, -k, k),
        "weight_out": jax.random.uniform(keys[5], (vocab_size, hidden_dim),
                                         jnp.float32, -k, k),
        "bias_out": jax.random.uniform(keys[6], (vocab_size,),
                                       jnp.float32, -k, k),
    }


if __name__ == "__main__":
    EMBEDDING_DIM = 16
    HIDDEN_DIM = 32
    VOCAB_SIZE = 50
    SEQ_LEN = 8

    key = jax.random.PRNGKey(0)
    pkey, skey = jax.random.split(key)
    params = make_params(pkey, EMBEDDING_DIM, HIDDEN_DIM, VOCAB_SIZE)
    sentence = jax.random.randint(skey, (SEQ_LEN,), 0, VOCAB_SIZE, jnp.int32)

    scores = jax.block_until_ready(lstm_lm_forward(sentence, params))
    ref = jax.block_until_ready(lstm_lm_reference(sentence, params))

    assert scores.shape == (SEQ_LEN, VOCAB_SIZE)
    assert jnp.allclose(scores, ref, atol=1e-5, rtol=1e-5), (
        f"max abs err {jnp.max(jnp.abs(scores - ref))}")

    print("KERNEL_OK")
</pallas_src>

<mosaic_0001>
module attributes {stable_mosaic.version = 11 : i64} {
  func.func @matmul_bias_kernel(%arg0: i32, %arg1: i32, %arg2: memref<128x128xf32, #tpu.memory_space<vmem>>, %arg3: memref<128x512xf32, #tpu.memory_space<vmem>>, %arg4: memref<1x512xf32, #tpu.memory_space<vmem>>, %arg5: memref<128x512xf32, #tpu.memory_space<vmem>>) attributes {dimension_semantics = [#tpu.dimension_semantics<parallel>, #tpu.dimension_semantics<parallel>], iteration_bounds = array<i64: 1, 1>, scalar_prefetch = 0 : i64, scratch_operands = 0 : i64, tpu.core_type = #tpu.core_type<tc>, window_params = [{transform_indices = @transform_0, window_bounds = array<i64: 128, 128>}, {transform_indices = @transform_1, window_bounds = array<i64: 128, 512>}, {transform_indices = @transform_2, window_bounds = array<i64: 1, 512>}, {transform_indices = @transform_3, window_bounds = array<i64: 128, 512>}]} {
    %c0 = arith.constant 0 : index
    %c0_0 = arith.constant 0 : index
    %0 = vector.load %arg2[%c0, %c0_0] : memref<128x128xf32, #tpu.memory_space<vmem>>, vector<128x128xf32>
    %c0_1 = arith.constant 0 : index
    %c0_2 = arith.constant 0 : index
    %1 = vector.load %arg3[%c0_1, %c0_2] : memref<128x512xf32, #tpu.memory_space<vmem>>, vector<128x512xf32>
    %cst = arith.constant dense<0.000000e+00> : vector<128x512xf32>
    %2 = tpu.matmul %0, %1, %cst {dimension_numbers = #tpu.dot_dimension_numbers<[1], [0], [0], [1], [0, 0, 1, 1], [], []>} : vector<128x128xf32>, vector<128x512xf32>, vector<128x512xf32> -> vector<128x512xf32>
    %c0_3 = arith.constant 0 : index
    %c0_4 = arith.constant 0 : index
    %3 = vector.load %arg4[%c0_3, %c0_4] : memref<1x512xf32, #tpu.memory_space<vmem>>, vector<1x512xf32>
    %4 = vector.broadcast %3 : vector<1x512xf32> to vector<128x512xf32>
    %5 = arith.addf %2, %4 : vector<128x512xf32>
    %c0_5 = arith.constant 0 : index
    %c0_6 = arith.constant 0 : index
    %6 = vector.load %arg5[%c0_5, %c0_6] : memref<128x512xf32, #tpu.memory_space<vmem>>, vector<128x512xf32>
    tpu.vector_store %arg5[%c0_5, %c0_6], %5 {strides = array<i32>} : memref<128x512xf32, #tpu.memory_space<vmem>>, vector<128x512xf32>,
    return
  }
  func.func @transform_0(%arg0: i32, %arg1: i32) -> (i32, i32) {
    %c0_i32 = arith.constant 0 : i32
    %c0_i32_0 = arith.constant 0 : i32
    return %arg0, %c0_i32 : i32, i32
  }
  func.func @transform_1(%arg0: i32, %arg1: i32) -> (i32, i32) {
    %c0_i32 = arith.constant 0 : i32
    %c0_i32_0 = arith.constant 0 : i32
    return %c0_i32, %arg1 : i32, i32
  }
  func.func @transform_2(%arg0: i32, %arg1: i32) -> (i32, i32) {
    %c0_i32 = arith.constant 0 : i32
    %c0_i32_0 = arith.constant 0 : i32
    return %c0_i32, %arg1 : i32, i32
  }
  func.func @transform_3(%arg0: i32, %arg1: i32) -> (i32, i32) {
    %c0_i32 = arith.constant 0 : i32
    return %arg0, %arg1 : i32, i32
  }
}

</mosaic_0001>

<bundles_post_ra>
// kernel: tpu_custom_call.1
= control target key start
LH: loop header
LB: loop body
LE: loop exit
PB: predicated region body
PF: predicated region fallthrough
CT: control target
= control target key end

     0   :  { %8 = vsyncpa [#allocation3], 0  ;;  %s806_s0 = inlined_call_operand.hbm [shape: f32[128,128], index: 0, kind: input, shape index: {}]   ;;  %s807_s1 = inlined_call_operand.hbm [shape: f32[128,512], index: 1, kind: input, shape index: {}]   ;;  %s808_s2 = inlined_call_operand.hbm [shape: f32[1,512], index: 2, kind: input, shape index: {}]   ;;  %s809_s3 = inlined_call_operand.hbm [shape: f32[128,512], index: 3, kind: output, shape index: {}]  }
   0x1   :  { %9 = vsyncpa [#allocation6], 0 }
   0x2   :  { %10 = vsyncpa [#allocation4], 0  ;;  %s655_s12 = smov [#allocation5]  }
   0x3   :  { %s28_s13 = sshll.u32 %s655_s12, 4  ;;  %s29_s13 = int_to_ptr.vmem [resolvable:$true] %s28_s13 }
   0x4   :  { %s577_s14 = scalar_lea.vmem %s29_s13, 8192  ;;  %p582_p1 = scmp.lt.s32.totalorder %s29_s13, %s29_s13 }
   0x5   :  { %p578_p0 = scmp.ne.s32.totalorder %s29_s13, %s577_s14  ;;  %p583_p2 = scmp.lt.s32.totalorder %s577_s14, %s577_s14 }
   0x7   :  { %p584_p3 = por %p583_p2, %p582_p1 }
   0x9   :  { %p585_p4 = pnand %p584_p3, %p578_p0 }
   0xb   :  { %588 = shalt.err (!%p585_p4)
}
   0xc   :  { %s656_s15 = smov 512   ;;  %s657_s16 = smov 32  }
   0xd   :  { %34 = dma.hbm_to_vmem [thread:$0]  %s807_s1, 8192, %s29_s13, [#allocation6], %s656_s15, %s656_s15, %s657_s16  }
   0xe   :  { %s658_s19 = smov [#allocation2]  }
   0xf   :  { %s16_s20 = sshll.u32 %s658_s19, 4  ;;  %s17_s20 = int_to_ptr.vmem [resolvable:$true] %s16_s20 }
  0x10   :  { %s597_s21 = scalar_lea.vmem %s17_s20, 2048  ;;  %p602_p6 = scmp.lt.s32.totalorder %s17_s20, %s17_s20 }
  0x11   :  { %p598_p5 = scmp.ne.s32.totalorder %s17_s20, %s597_s21  ;;  %p603_p7 = scmp.lt.s32.totalorder %s597_s21, %s597_s21 }
  0x13   :  { %p604_p8 = por %p603_p7, %p602_p6 }
  0x15   :  { %p605_p9 = pnand %p604_p8, %p598_p5 }
  0x17   :  { %608 = shalt.err (!%p605_p9)
}
  0x18   :  { %s659_s22 = smov 128   ;;  %s660_s23 = smov 8  }
  0x19   :  { %22 = dma.hbm_to_vmem [thread:$0]  %s806_s0, 2048, %s17_s20, [#allocation3], %s659_s22, %s659_s22, %s660_s23  }
  0x1a   :  { %s661_s26 = smov [#allocation7]  }
  0x1b   :  { %s41_s27 = sshll.u32 %s661_s26, 4  ;;  %s42_s27 = int_to_ptr.vmem [resolvable:$true] %s41_s27 }
  0x1c   :  { %s617_s1 = scalar_lea.vmem %s42_s27, 64  ;;  %p622_p11 = scmp.lt.s32.totalorder %s42_s27, %s42_s27 }
  0x1d   :  { %p618_p10 = scmp.ne.s32.totalorder %s42_s27, %s617_s1  ;;  %p623_p12 = scmp.lt.s32.totalorder %s617_s1, %s617_s1 }
  0x1f   :  { %p624_p13 = por %p623_p12, %p622_p11 }
  0x21   :  { %p625_p0 = pnand %p624_p13, %p618_p10 }
  0x23   :  { %628 = shalt.err (!%p625_p0)
}
  0x24   :  { %44 = dma.hbm_to_vmem [thread:$0]  %s808_s2, 64, %s42_s27, [#allocation6]  }
  0x25   :  { %649 = dma.done.wait [#allocation3], 2048  }
  0x26   :  { %650 = vsyncadd [#allocation3], 4294965248 }
  0x27   :  { %651 = dma.done.wait [#allocation6], 8256  }
  0x28   :  { %652 = vsyncadd [#allocation6], 4294959040  ;;  %v662_v0 = vmov 0.0   ;;  %v131_v1 = vld [vmem:[#allocation5 + $0x1e8] sm:$0xff]  ;;  %v133_v2 = vld [vmem:[#allocation5 + $0x1f8] sm:$0xff]  ;;  %s663_s0 = smov [#allocation8]  }
  0x29   :  { %220 = vmatprep.mubr.f32.mxu0 %v662_v0  ;;  %381 = vmatprep.mubr.f32.mxu1 %v662_v0  ;;  %v130_v3 = vld [vmem:[#allocation5 + $0x1e0] sm:$0xff]  ;;  %v132_v4 = vld [vmem:[#allocation5 + $0x1f0] sm:$0xff]  ;;  %v127_v5 = vld [vmem:[#allocation5 + $0x1c8] sm:$0xff]  ;;  %s547_s2 = sshll.u32 %s663_s0, 4  ;;  %s548_s2 = int_to_ptr.vmem [resolvable:$true] %s547_s2 }
  0x2a   :  { %156 = vmatprep.subr.mxu0 %v131_v1  ;;  %317 = vmatprep.subr.mxu1 %v133_v2  ;;  %v129_v6 = vld [vmem:[#allocation5 + $0x1d8] sm:$0xff]  ;;  %v126_v7 = vld [vmem:[#allocation5 + $0x1c0] sm:$0xff]  ;;  %v128_v8 = vld [vmem:[#allocation5 + $0x1d0] sm:$0xff]  ;;  %s629_s30 = scalar_lea.vmem %s548_s2, 8192  ;;  %p634_p2 = scmp.lt.s32.totalorder %s548_s2, %s548_s2 }
  0x2b   :  { %157 = vmatpush1.msra.mxu0 %v130_v3  ;;  %318 = vmatpush1.msra.mxu1 %v132_v4  ;;  %v123_v9 = vld [vmem:[#allocation5 + $0x1a8] sm:$0xff]  ;;  %v125_v10 = vld [vmem:[#allocation5 + $0x1b8] sm:$0xff]  ;;  %v122_v11 = vld [vmem:[#allocation5 + $0x1a0] sm:$0xff]  ;;  %p630_p1 = scmp.ne.s32.totalorder %s548_s2, %s629_s30  ;;  %p635_p3 = scmp.lt.s32.totalorder %s629_s30, %s629_s30 }
  0x2c   :  { %158 = vmatprep.subr.mxu0 %v127_v5  ;;  %319 = vmatprep.subr.mxu1 %v129_v6  ;;  %v124_v12 = vld [vmem:[#allocation5 + $0x1b0] sm:$0xff]  ;;  %v119_v13 = vld [vmem:[#allocation5 + $0x188] sm:$0xff]  ;;  %v121_v14 = vld [vmem:[#allocation5 + $0x198] sm:$0xff] }
  0x2d   :  { %159 = vmatpush1.msra.mxu0 %v126_v7  ;;  %320 = vmatpush1.msra.mxu1 %v128_v8  ;;  %v118_v15 = vld [vmem:[#allocation5 + $0x180] sm:$0xff]  ;;  %v120_v16 = vld [vmem:[#allocation5 + $0x190] sm:$0xff]  ;;  %v115_v17 = vld [vmem:[#allocation5 + $0x168] sm:$0xff]  ;;  %p636_p4 = por %p635_p3, %p634_p2 }
  0x2e   :  { %160 = vmatprep.subr.mxu0 %v123_v9  ;;  %321 = vmatprep.subr.mxu1 %v125_v10  ;;  %v117_v18 = vld [vmem:[#allocation5 + $0x178] sm:$0xff]  ;;  %v114_v19 = vld [vmem:[#allocation5 + $0x160] sm:$0xff]  ;;  %v116_v20 = vld [vmem:[#allocation5 + $0x170] sm:$0xff] }
  0x2f   :  { %161 = vmatpush1.msra.mxu0 %v122_v11  ;;  %322 = vmatpush1.msra.mxu1 %v124_v12  ;;  %v111_v21 = vld [vmem:[#allocation5 + $0x148] sm:$0xff]  ;;  %v113_v22 = vld [vmem:[#allocation5 + $0x158] sm:$0xff]  ;;  %v110_v23 = vld [vmem:[#allocation5 + $0x140] sm:$0xff]  ;;  %p637_p5 = pnand %p636_p4, %p630_p1 }
  0x30   :  { %162 = vmatprep.subr.mxu0 %v119_v13  ;;  %323 = vmatprep.subr.mxu1 %v121_v14  ;;  %v112_v24 = vld [vmem:[#allocation5 + $0x150] sm:$0xff]  ;;  %v107_v25 = vld [vmem:[#allocation5 + $0x128] sm:$0xff]  ;;  %v109_v26 = vld [vmem:[#allocation5 + $0x138] sm:$0xff] }
  0x31   :  { %163 = vmatpush1.msra.mxu0 %v118_v15  ;;  %324 = vmatpush1.msra.mxu1 %v120_v16  ;;  %v106_v27 = vld [vmem:[#allocation5 + $0x120] sm:$0xff]  ;;  %v108_v28 = vld [vmem:[#allocation5 + $0x130] sm:$0xff]  ;;  %v103_v29 = vld [vmem:[#allocation5 + $0x108] sm:$0xff] }
  0x32   :  { %164 = vmatprep.subr.mxu0 %v115_v17  ;;  %325 = vmatprep.subr.mxu1 %v117_v18  ;;  %v105_v30 = vld [vmem:[#allocation5 + $0x118] sm:$0xff]  ;;  %v102_v31 = vld [vmem:[#allocation5 + $0x100] sm:$0xff]  ;;  %v104_v32 = vld [vmem:[#allocation5 + $0x110] sm:$0xff]  ;;  %v136_v18 = vlaneseq }
  0x33   :  { %165 = vmatpush1.msra.mxu0 %v114_v19  ;;  %326 = vmatpush1.msra.mxu1 %v116_v20  ;;  %v99_v33 = vld [vmem:[#allocation5 + $0xe8] sm:$0xff]  ;;  %v101_v34 = vld [vmem:[#allocation5 + $0xf8] sm:$0xff]  ;;  %v98_v35 = vld [vmem:[#allocation5 + $0xe0] sm:$0xff] }
  0x34   :  { %166 = vmatprep.subr.mxu0 %v111_v21  ;;  %327 = vmatprep.subr.mxu1 %v113_v22  ;;  %v100_v36 = vld [vmem:[#allocation5 + $0xf0] sm:$0xff]  ;;  %v95_v37 = vld [vmem:[#allocation5 + $0xc8] sm:$0xff]  ;;  %v97_v38 = vld [vmem:[#allocation5 + $0xd8] sm:$0xff]  ;;  %v137_v19 = vshrl.u32 %v136_v18, 7 }
  0x35   :  { %167 = vmatpush1.msra.mxu0 %v110_v23  ;;  %328 = vmatpush1.msra.mxu1 %v112_v24  ;;  %v94_v39 = vld [vmem:[#allocation5 + $0xc0] sm:$0xff]  ;;  %v96_v40 = vld [vmem:[#allocation5 + $0xd0] sm:$0xff]  ;;  %v91_v41 = vld [vmem:[#allocation5 + $0xa8] sm:$0xff] }
  0x36   :  { %168 = vmatprep.subr.mxu0 %v107_v25  ;;  %329 = vmatprep.subr.mxu1 %v109_v26  ;;  %v93_v42 = vld [vmem:[#allocation5 + $0xb8] sm:$0xff]  ;;  %v90_v43 = vld [vmem:[#allocation5 + $0xa0] sm:$0xff]  ;;  %v92_v44 = vld [vmem:[#allocation5 + $0xb0] sm:$0xff]  ;;  %v138_v20 = vsub.s32 0, %v137_v19  ;;  %v146_v21 = vsub.s32 2, %v137_v19  ;;  %v142_v23 = vsub.s32 1, %v137_v19 }
  0x37   :  { %169 = vmatpush1.msra.mxu0 %v106_v27  ;;  %330 = vmatpush1.msra.mxu1 %v108_v28  ;;  %v87_v45 = vld [vmem:[#allocation5 + $0x88] sm:$0xff]  ;;  %v89_v46 = vld [vmem:[#allocation5 + $0x98] sm:$0xff]  ;;  %v86_v47 = vld [vmem:[#allocation5 + $0x80] sm:$0xff]  ;;  %v150_v24 = vsub.s32 3, %v137_v19 }
  0x38   :  { %170 = vmatprep.subr.mxu0 %v103_v29  ;;  %331 = vmatprep.subr.mxu1 %v105_v30  ;;  %v88_v48 = vld [vmem:[#allocation5 + $0x90] sm:$0xff]  ;;  %v83_v49 = vld [vmem:[#allocation5 + $0x68] sm:$0xff]  ;;  %v85_v50 = vld [vmem:[#allocation5 + $0x78] sm:$0xff] }
  0x39   :  { %171 = vmatpush1.msra.mxu0 %v102_v31  ;;  %332 = vmatpush1.msra.mxu1 %v104_v32  ;;  %v82_v51 = vld [vmem:[#allocation5 + $0x60] sm:$0xff]  ;;  %v84_v52 = vld [vmem:[#allocation5 + $0x70] sm:$0xff]  ;;  %v79_v53 = vld [vmem:[#allocation5 + $0x48] sm:$0xff] }
  0x3a   :  { %172 = vmatprep.subr.mxu0 %v99_v33  ;;  %333 = vmatprep.subr.mxu1 %v101_v34  ;;  %v81_v54 = vld [vmem:[#allocation5 + $0x58] sm:$0xff]  ;;  %v78_v55 = vld [vmem:[#allocation5 + $0x40] sm:$0xff]  ;;  %v80_v56 = vld [vmem:[#allocation5 + $0x50] sm:$0xff] }
  0x3b   :  { %173 = vmatpush1.msra.mxu0 %v98_v35  ;;  %334 = vmatpush1.msra.mxu1 %v100_v36  ;;  %v75_v57 = vld [vmem:[#allocation5 + $0x28] sm:$0xff]  ;;  %v77_v58 = vld [vmem:[#allocation5 + $0x38] sm:$0xff]  ;;  %v74_v59 = vld [vmem:[#allocation5 + $0x20] sm:$0xff] }
  0x3c   :  { %174 = vmatprep.subr.mxu0 %v95_v37  ;;  %335 = vmatprep.subr.mxu1 %v97_v38  ;;  %v76_v60 = vld [vmem:[#allocation5 + $0x30] sm:$0xff]  ;;  %v71_v61 = vld [vmem:[#allocation5 + $0x8] sm:$0xff]  ;;  %v73_v62 = vld [vmem:[#allocation5 + $0x18] sm:$0xff] }
  0x3d   :  { %175 = vmatpush1.msra.mxu0 %v94_v39  ;;  %336 = vmatpush1.msra.mxu1 %v96_v40  ;;  %v70_v63 = vld [vmem:[#allocation5] sm:$0xff]  ;;  %v72_v1 = vld [vmem:[#allocation5 + $0x10] sm:$0xff]  ;;  %v55_v3 = vld [vmem:[#allocation2 + $0x8] sm:$0xff] }
  0x3e   :  { %176 = vmatprep.subr.mxu0 %v91_v41  ;;  %337 = vmatprep.subr.mxu1 %v93_v42  ;;  %v54_v2 = vld [vmem:[#allocation2] sm:$0xff]  ;;  %v56_v4 = vld [vmem:[#allocation2 + $0x10] sm:$0xff]  ;;  %v57_v5 = vld [vmem:[#allocation2 + $0x18] sm:$0xff] }
  0x3f   :  { %177 = vmatpush1.msra.mxu0 %v90_v43  ;;  %338 = vmatpush1.msra.mxu1 %v92_v44  ;;  %v58_v6 = vld [vmem:[#allocation2 + $0x20] sm:$0xff]  ;;  %v59_v7 = vld [vmem:[#allocation2 + $0x28] sm:$0xff]  ;;  %v60_v8 = vld [vmem:[#allocation2 + $0x30] sm:$0xff] }
  0x40   :  { %178 = vmatprep.subr.mxu0 %v87_v45  ;;  %339 = vmatprep.subr.mxu1 %v89_v46  ;;  %v61_v9 = vld [vmem:[#allocation2 + $0x38] sm:$0xff]  ;;  %v62_v10 = vld [vmem:[#allocation2 + $0x40] sm:$0xff]  ;;  %v63_v11 = vld [vmem:[#allocation2 + $0x48] sm:$0xff] }
  0x41   :  { %179 = vmatpush1.msra.mxu0 %v86_v47  ;;  %340 = vmatpush1.msra.mxu1 %v88_v48  ;;  %v64_v12 = vld [vmem:[#allocation2 + $0x50] sm:$0xff]  ;;  %v65_v13 = vld [vmem:[#allocation2 + $0x58] sm:$0xff]  ;;  %v66_v14 = vld [vmem:[#allocation2 + $0x60] sm:$0xff] }
  0x42   :  { %180 = vmatprep.subr.mxu0 %v83_v49  ;;  %341 = vmatprep.subr.mxu1 %v85_v50  ;;  %v67_v15 = vld [vmem:[#allocation2 + $0x68] sm:$0xff]  ;;  %v68_v16 = vld [vmem:[#allocation2 + $0x70] sm:$0xff]  ;;  %v69_v17 = vld [vmem:[#allocation2 + $0x78] sm:$0xff] }
  0x43   :  { %181 = vmatpush1.msra.mxu0 %v82_v51  ;;  %342 = vmatpush1.msra.mxu1 %v84_v52  ;;  %v134_v22 = vld [vmem:[#allocation7] sm:$0xf] }
  0x44   :  { %182 = vmatprep.subr.mxu0 %v79_v53  ;;  %343 = vmatprep.subr.mxu1 %v81_v54  ;;  %v728_v25 = vrot.slane %v134_v22, %v138_v20  ;;  %v730_v26 = vrot.slane %v134_v22, %v146_v21  ;;  %v732_v27 = vrot.slane %v134_v22, %v142_v23 }
  0x45   :  { %183 = vmatpush1.msra.mxu0 %v78_v55  ;;  %344 = vmatpush1.msra.mxu1 %v80_v56  ;;  %v734_v28 = vrot.slane %v134_v22, %v150_v24 }
  0x46   :  { %184 = vmatprep.subr.mxu0 %v75_v57  ;;  %345 = vmatprep.subr.mxu1 %v77_v58 }
  0x47   :  { %185 = vmatpush1.msra.mxu0 %v74_v59  ;;  %346 = vmatpush1.msra.mxu1 %v76_v60 }
  0x48   :  { %186 = vmatprep.subr.mxu0 %v71_v61  ;;  %347 = vmatprep.subr.mxu1 %v73_v62 }
  0x49   :  { %187 = vmatpush1.msra.mxu0 %v70_v63  ;;  %348 = vmatpush1.msra.mxu1 %v72_v1 }
  0x4a   :  { %221 = vmatmul.mubr.f32.vlgmr.msra.gmra.mxu0 %v54_v2  ;;  %382 = vmatmul.mubr.f32.vlgmr.msra.gmra.mxu1 %v54_v2 }
  0x4b   :  { %226 = vmatprep.mubr.f32.mxu0 %v662_v0  ;;  %387 = vmatprep.mubr.f32.mxu1 %v662_v0 }
  0x4e   :  { %227 = vmatmul.mubr.f32.gmra.mxu0 %v55_v3  ;;  %388 = vmatmul.mubr.f32.gmra.mxu1 %v55_v3 }
  0x4f   :  { %232 = vmatprep.mubr.f32.mxu0 %v662_v0  ;;  %393 = vmatprep.mubr.f32.mxu1 %v662_v0 }
  0x52   :  { %233 = vmatmul.mubr.f32.gmra.mxu0 %v56_v4  ;;  %394 = vmatmul.mubr.f32.gmra.mxu1 %v56_v4 }
  0x53   :  { %238 = vmatprep.mubr.f32.mxu0 %v662_v0  ;;  %399 = vmatprep.mubr.f32.mxu1 %v662_v0 }
  0x56   :  { %239 = vmatmul.mubr.f32.gmra.mxu0 %v57_v5  ;;  %400 = vmatmul.mubr.f32.gmra.mxu1 %v57_v5 }
  0x57   :  { %244 = vmatprep.mubr.f32.mxu0 %v662_v0  ;;  %405 = vmatprep.mubr.f32.mxu1 %v662_v0 }
  0x5a   :  { %245 = vmatmul.mubr.f32.gmra.mxu0 %v58_v6  ;;  %406 = vmatmul.mubr.f32.gmra.mxu1 %v58_v6 }
  0x5b   :  { %250 = vmatprep.mubr.f32.mxu0 %v662_v0  ;;  %411 = vmatprep.mubr.f32.mxu1 %v662_v0 }
  0x5e   :  { %251 = vmatmul.mubr.f32.gmra.mxu0 %v59_v7  ;;  %412 = vmatmul.mubr.f32.gmra.mxu1 %v59_v7 }
  0x5f   :  { %256 = vmatprep.mubr.f32.mxu0 %v662_v0  ;;  %417 = vmatprep.mubr.f32.mxu1 %v662_v0 }
  0x62   :  { %257 = vmatmul.mubr.f32.gmra.mxu0 %v60_v8  ;;  %418 = vmatmul.mubr.f32.gmra.mxu1 %v60_v8 }
  0x63   :  { %262 = vmatprep.mubr.f32.mxu0 %v662_v0  ;;  %423 = vmatprep.mubr.f32.mxu1 %v662_v0 }
  0x66   :  { %263 = vmatmul.mubr.f32.gmra.mxu0 %v61_v9  ;;  %424 = vmatmul.mubr.f32.gmra.mxu1 %v61_v9 }
  0x67   :  { %268 = vmatprep.mubr.f32.mxu0 %v662_v0  ;;  %429 = vmatprep.mubr.f32.mxu1 %v662_v0 }
  0x6a   :  { %269 = vmatmul.mubr.f32.gmra.mxu0 %v62_v10  ;;  %430 = vmatmul.mubr.f32.gmra.mxu1 %v62_v10 }
  0x6b   :  { %274 = vmatprep.mubr.f32.mxu0 %v662_v0  ;;  %435 = vmatprep.mubr.f32.mxu1 %v662_v0 }
  0x6e   :  { %275 = vmatmul.mubr.f32.gmra.mxu0 %v63_v11  ;;  %436 = vmatmul.mubr.f32.gmra.mxu1 %v63_v11 }
  0x6f   :  { %280 = vmatprep.mubr.f32.mxu0 %v662_v0  ;;  %441 = vmatprep.mubr.f32.mxu1 %v662_v0 }
  0x72   :  { %281 = vmatmul.mubr.f32.gmra.mxu0 %v64_v12  ;;  %442 = vmatmul.mubr.f32.gmra.mxu1 %v64_v12 }
  0x73   :  { %286 = vmatprep.mubr.f32.mxu0 %v662_v0  ;;  %447 = vmatprep.mubr.f32.mxu1 %v662_v0 }
  0x76   :  { %287 = vmatmul.mubr.f32.gmra.mxu0 %v65_v13  ;;  %448 = vmatmul.mubr.f32.gmra.mxu1 %v65_v13 }
  0x77   :  { %292 = vmatprep.mubr.f32.mxu0 %v662_v0  ;;  %453 = vmatprep.mubr.f32.mxu1 %v662_v0 }
  0x7a   :  { %293 = vmatmul.mubr.f32.gmra.mxu0 %v66_v14  ;;  %454 = vmatmul.mubr.f32.gmra.mxu1 %v66_v14 }
  0x7b   :  { %298 = vmatprep.mubr.f32.mxu0 %v662_v0  ;;  %459 = vmatprep.mubr.f32.mxu1 %v662_v0 }
  0x7e   :  { %299 = vmatmul.mubr.f32.gmra.mxu0 %v67_v15  ;;  %460 = vmatmul.mubr.f32.gmra.mxu1 %v67_v15 }
  0x7f   :  { %304 = vmatprep.mubr.f32.mxu0 %v662_v0  ;;  %465 = vmatprep.mubr.f32.mxu1 %v662_v0 }
  0x82   :  { %305 = vmatmul.mubr.f32.gmra.mxu0 %v68_v16  ;;  %466 = vmatmul.mubr.f32.gmra.mxu1 %v68_v16 }
  0x83   :  { %310 = vmatprep.mubr.f32.mxu0 %v662_v0  ;;  %471 = vmatprep.mubr.f32.mxu1 %v662_v0 }
  0x86   :  { %311 = vmatmul.mubr.f32.gmra.mxu0 %v69_v17  ;;  %472 = vmatmul.mubr.f32.gmra.mxu1 %v69_v17 }
 0x10a   :  { %v222_v29 = vpop.f32.mrf.mxu0  ;;  %v383_v0 = vpop.f32.mrf.mxu1 }
 0x10b   :  { %v223_v30 = vadd.f32 %v222_v29, %v728_v25  ;;  %v384_v31 = vadd.f32 %v383_v0, %v730_v26 }
 0x10c   :  { %v224_v32 = vpop.f32.mrf.mxu0  ;;  %v385_v33 = vpop.f32.mrf.mxu1 }
 0x10d   :  { %478 = vst [vmem:[#allocation8] sm:$0xff] %v223_v30  ;;  %480 = vst [vmem:[#allocation8 + $0x10] sm:$0xff] %v384_v31  ;;  %v225_v34 = vadd.f32 %v224_v32, %v732_v27  ;;  %v386_v35 = vadd.f32 %v385_v33, %v734_v28 }
 0x10e   :  { %v228_v36 = vpop.f32.mrf.mxu0  ;;  %v389_v37 = vpop.f32.mrf.mxu1 }
 0x10f   :  { %479 = vst [vmem:[#allocation8 + $0x8] sm:$0xff] %v225_v34  ;;  %481 = vst [vmem:[#allocation8 + $0x18] sm:$0xff] %v386_v35  ;;  %v229_v38 = vadd.f32 %v228_v36, %v728_v25  ;;  %v390_v39 = vadd.f32 %v389_v37, %v730_v26 }
 0x110   :  { %v230_v40 = vpop.f32.mrf.mxu0  ;;  %v391_v41 = vpop.f32.mrf.mxu1 }
 0x111   :  { %482 = vst [vmem:[#allocation8 + $0x20] sm:$0xff] %v229_v38  ;;  %484 = vst [vmem:[#allocation8 + $0x30] sm:$0xff] %v390_v39  ;;  %v231_v42 = vadd.f32 %v230_v40, %v732_v27  ;;  %v392_v43 = vadd.f32 %v391_v41, %v734_v28 }
 0x112   :  { %v234_v44 = vpop.f32.mrf.mxu0  ;;  %v395_v45 = vpop.f32.mrf.mxu1 }
 0x113   :  { %483 = vst [vmem:[#allocation8 + $0x28] sm:$0xff] %v231_v42  ;;  %485 = vst [vmem:[#allocation8 + $0x38] sm:$0xff] %v392_v43  ;;  %v235_v46 = vadd.f32 %v234_v44, %v728_v25  ;;  %v396_v47 = vadd.f32 %v395_v45, %v730_v26 }
 0x114   :  { %v236_v48 = vpop.f32.mrf.mxu0  ;;  %v397_v49 = vpop.f32.mrf.mxu1 }
 0x115   :  { %486 = vst [vmem:[#allocation8 + $0x40] sm:$0xff] %v235_v46  ;;  %488 = vst [vmem:[#allocation8 + $0x50] sm:$0xff] %v396_v47  ;;  %v237_v50 = vadd.f32 %v236_v48, %v732_v27  ;;  %v398_v51 = vadd.f32 %v397_v49, %v734_v28 }
 0x116   :  { %v240_v52 = vpop.f32.mrf.mxu0  ;;  %v401_v53 = vpop.f32.mrf.mxu1 }
 0x117   :  { %487 = vst [vmem:[#allocation8 + $0x48] sm:$0xff] %v237_v50  ;;  %489 = vst [vmem:[#allocation8 + $0x58] sm:$0xff] %v398_v51  ;;  %v241_v54 = vadd.f32 %v240_v52, %v728_v25  ;;  %v402_v55 = vadd.f32 %v401_v53, %v730_v26 }
 0x118   :  { %v242_v56 = vpop.f32.mrf.mxu0  ;;  %v403_v57 = vpop.f32.mrf.mxu1 }
 0x119   :  { %490 = vst [vmem:[#allocation8 + $0x60] sm:$0xff] %v241_v54  ;;  %492 = vst [vmem:[#allocation8 + $0x70] sm:$0xff] %v402_v55  ;;  %v243_v58 = vadd.f32 %v242_v56, %v732_v27  ;;  %v404_v59 = vadd.f32 %v403_v57, %v734_v28 }
 0x11a   :  { %v246_v60 = vpop.f32.mrf.mxu0  ;;  %v407_v61 = vpop.f32.mrf.mxu1 }
 0x11b   :  { %491 = vst [vmem:[#allocation8 + $0x68] sm:$0xff] %v243_v58  ;;  %493 = vst [vmem:[#allocation8 + $0x78] sm:$0xff] %v404_v59  ;;  %v247_v62 = vadd.f32 %v246_v60, %v728_v25  ;;  %v408_v63 = vadd.f32 %v407_v61, %v730_v26 }
 0x11c   :  { %v248_v1 = vpop.f32.mrf.mxu0  ;;  %v409_v2 = vpop.f32.mrf.mxu1 }
 0x11d   :  { %494 = vst [vmem:[#allocation8 + $0x80] sm:$0xff] %v247_v62  ;;  %496 = vst [vmem:[#allocation8 + $0x90] sm:$0xff] %v408_v63  ;;  %v249_v3 = vadd.f32 %v248_v1, %v732_v27  ;;  %v410_v4 = vadd.f32 %v409_v2, %v734_v28 }
 0x11e   :  { %v252_v5 = vpop.f32.mrf.mxu0  ;;  %v413_v6 = vpop.f32.mrf.mxu1 }
 0x11f   :  { %495 = vst [vmem:[#allocation8 + $0x88] sm:$0xff] %v249_v3  ;;  %497 = vst [vmem:[#allocation8 + $0x98] sm:$0xff] %v410_v4  ;;  %v253_v7 = vadd.f32 %v252_v5, %v728_v25  ;;  %v414_v8 = vadd.f32 %v413_v6, %v730_v26 }
 0x120   :  { %v254_v9 = vpop.f32.mrf.mxu0  ;;  %v415_v10 = vpop.f32.mrf.mxu1 }
 0x121   :  { %498 = vst [vmem:[#allocation8 + $0xa0] sm:$0xff] %v253_v7  ;;  %500 = vst [vmem:[#allocation8 + $0xb0] sm:$0xff] %v414_v8  ;;  %v255_v11 = vadd.f32 %v254_v9, %v732_v27  ;;  %v416_v12 = vadd.f32 %v415_v10, %v734_v28 }
 0x122   :  { %v258_v13 = vpop.f32.mrf.mxu0  ;;  %v419_v14 = vpop.f32.mrf.mxu1 }
 0x123   :  { %499 = vst [vmem:[#allocation8 + $0xa8] sm:$0xff] %v255_v11  ;;  %501 = vst [vmem:[#allocation8 + $0xb8] sm:$0xff] %v416_v12  ;;  %v259_v15 = vadd.f32 %v258_v13, %v728_v25  ;;  %v420_v16 = vadd.f32 %v419_v14, %v730_v26 }
 0x124   :  { %v260_v17 = vpop.f32.mrf.mxu0  ;;  %v421_v18 = vpop.f32.mrf.mxu1 }
 0x125   :  { %502 = vst [vmem:[#allocation8 + $0xc0] sm:$0xff] %v259_v15  ;;  %504 = vst [vmem:[#allocation8 + $0xd0] sm:$0xff] %v420_v16  ;;  %v261_v19 = vadd.f32 %v260_v17, %v732_v27  ;;  %v422_v20 = vadd.f32 %v421_v18, %v734_v28 }
 0x126   :  { %v264_v21 = vpop.f32.mrf.mxu0  ;;  %v425_v22 = vpop.f32.mrf.mxu1 }
 0x127   :  { %503 = vst [vmem:[#allocation8 + $0xc8] sm:$0xff] %v261_v19  ;;  %505 = vst [vmem:[#allocation8 + $0xd8] sm:$0xff] %v422_v20  ;;  %v265_v23 = vadd.f32 %v264_v21, %v728_v25  ;;  %v426_v24 = vadd.f32 %v425_v22, %v730_v26 }
 0x128   :  { %v266_v29 = vpop.f32.mrf.mxu0  ;;  %v427_v0 = vpop.f32.mrf.mxu1 }
 0x129   :  { %506 = vst [vmem:[#allocation8 + $0xe0] sm:$0xff] %v265_v23  ;;  %508 = vst [vmem:[#allocation8 + $0xf0] sm:$0xff] %v426_v24  ;;  %v267_v30 = vadd.f32 %v266_v29, %v732_v27  ;;  %v428_v31 = vadd.f32 %v427_v0, %v734_v28 }
 0x12a   :  { %v270_v32 = vpop.f32.mrf.mxu0  ;;  %v431_v33 = vpop.f32.mrf.mxu1 }
 0x12b   :  { %507 = vst [vmem:[#allocation8 + $0xe8] sm:$0xff] %v267_v30  ;;  %509 = vst [vmem:[#allocation8 + $0xf8] sm:$0xff] %v428_v31  ;;  %v271_v34 = vadd.f32 %v270_v32, %v728_v25  ;;  %v432_v35 = vadd.f32 %v431_v33, %v730_v26 }
 0x12c   :  { %v272_v36 = vpop.f32.mrf.mxu0  ;;  %v433_v37 = vpop.f32.mrf.mxu1 }
 0x12d   :  { %510 = vst [vmem:[#allocation8 + $0x100] sm:$0xff] %v271_v34  ;;  %512 = vst [vmem:[#allocation8 + $0x110] sm:$0xff] %v432_v35  ;;  %v273_v38 = vadd.f32 %v272_v36, %v732_v27  ;;  %v434_v39 = vadd.f32 %v433_v37, %v734_v28 }
 0x12e   :  { %v276_v40 = vpop.f32.mrf.mxu0  ;;  %v437_v41 = vpop.f32.mrf.mxu1 }
 0x12f   :  { %511 = vst [vmem:[#allocation8 + $0x108] sm:$0xff] %v273_v38  ;;  %513 = vst [vmem:[#allocation8 + $0x118] sm:$0xff] %v434_v39  ;;  %v277_v42 = vadd.f32 %v276_v40, %v728_v25  ;;  %v438_v43 = vadd.f32 %v437_v41, %v730_v26 }
 0x130   :  { %v278_v44 = vpop.f32.mrf.mxu0  ;;  %v439_v45 = vpop.f32.mrf.mxu1 }
 0x131   :  { %514 = vst [vmem:[#allocation8 + $0x120] sm:$0xff] %v277_v42  ;;  %516 = vst [vmem:[#allocation8 + $0x130] sm:$0xff] %v438_v43  ;;  %v279_v46 = vadd.f32 %v278_v44, %v732_v27  ;;  %v440_v47 = vadd.f32 %v439_v45, %v734_v28 }
 0x132   :  { %v282_v48 = vpop.f32.mrf.mxu0  ;;  %v443_v49 = vpop.f32.mrf.mxu1 }
 0x133   :  { %515 = vst [vmem:[#allocation8 + $0x128] sm:$0xff] %v279_v46  ;;  %517 = vst [vmem:[#allocation8 + $0x138] sm:$0xff] %v440_v47  ;;  %v283_v50 = vadd.f32 %v282_v48, %v728_v25  ;;  %v444_v51 = vadd.f32 %v443_v49, %v730_v26 }
 0x134   :  { %v284_v52 = vpop.f32.mrf.mxu0  ;;  %v445_v53 = vpop.f32.mrf.mxu1 }
 0x135   :  { %518 = vst [vmem:[#allocation8 + $0x140] sm:$0xff] %v283_v50  ;;  %520 = vst [vmem:[#allocation8 + $0x150] sm:$0xff] %v444_v51  ;;  %v285_v54 = vadd.f32 %v284_v52, %v732_v27  ;;  %v446_v55 = vadd.f32 %v445_v53, %v734_v28 }
 0x136   :  { %v288_v56 = vpop.f32.mrf.mxu0  ;;  %v449_v57 = vpop.f32.mrf.mxu1 }
 0x137   :  { %519 = vst [vmem:[#allocation8 + $0x148] sm:$0xff] %v285_v54  ;;  %521 = vst [vmem:[#allocation8 + $0x158] sm:$0xff] %v446_v55  ;;  %v289_v58 = vadd.f32 %v288_v56, %v728_v25  ;;  %v450_v59 = vadd.f32 %v449_v57, %v730_v26 }
 0x138   :  { %v290_v60 = vpop.f32.mrf.mxu0  ;;  %v451_v61 = vpop.f32.mrf.mxu1 }
 0x139   :  { %522 = vst [vmem:[#allocation8 + $0x160] sm:$0xff] %v289_v58  ;;  %524 = vst [vmem:[#allocation8 + $0x170] sm:$0xff] %v450_v59  ;;  %v291_v62 = vadd.f32 %v290_v60, %v732_v27  ;;  %v452_v63 = vadd.f32 %v451_v61, %v734_v28 }
 0x13a   :  { %v294_v1 = vpop.f32.mrf.mxu0  ;;  %v455_v2 = vpop.f32.mrf.mxu1 }
 0x13b   :  { %523 = vst [vmem:[#allocation8 + $0x168] sm:$0xff] %v291_v62  ;;  %525 = vst [vmem:[#allocation8 + $0x178] sm:$0xff] %v452_v63  ;;  %v295_v3 = vadd.f32 %v294_v1, %v728_v25  ;;  %v456_v4 = vadd.f32 %v455_v2, %v730_v26 }
 0x13c   :  { %v296_v5 = vpop.f32.mrf.mxu0  ;;  %v457_v6 = vpop.f32.mrf.mxu1 }
 0x13d   :  { %526 = vst [vmem:[#allocation8 + $0x180] sm:$0xff] %v295_v3  ;;  %528 = vst [vmem:[#allocation8 + $0x190] sm:$0xff] %v456_v4  ;;  %v297_v7 = vadd.f32 %v296_v5, %v732_v27  ;;  %v458_v8 = vadd.f32 %v457_v6, %v734_v28 }
 0x13e   :  { %v300_v9 = vpop.f32.mrf.mxu0  ;;  %v461_v10 = vpop.f32.mrf.mxu1 }
 0x13f   :  { %527 = vst [vmem:[#allocation8 + $0x188] sm:$0xff] %v297_v7  ;;  %529 = vst [vmem:[#allocation8 + $0x198] sm:$0xff] %v458_v8  ;;  %v301_v11 = vadd.f32 %v300_v9, %v728_v25  ;;  %v462_v12 = vadd.f32 %v461_v10, %v730_v26 }
 0x140   :  { %v302_v13 = vpop.f32.mrf.mxu0  ;;  %v463_v14 = vpop.f32.mrf.mxu1 }
 0x141   :  { %530 = vst [vmem:[#allocation8 + $0x1a0] sm:$0xff] %v301_v11  ;;  %532 = vst [vmem:[#allocation8 + $0x1b0] sm:$0xff] %v462_v12  ;;  %v303_v15 = vadd.f32 %v302_v13, %v732_v27  ;;  %v464_v16 = vadd.f32 %v463_v14, %v734_v28 }
 0x142   :  { %v306_v17 = vpop.f32.mrf.mxu0  ;;  %v467_v18 = vpop.f32.mrf.mxu1 }
 0x143   :  { %531 = vst [vmem:[#allocation8 + $0x1a8] sm:$0xff] %v303_v15  ;;  %533 = vst [vmem:[#allocation8 + $0x1b8] sm:$0xff] %v464_v16  ;;  %v307_v19 = vadd.f32 %v306_v17, %v728_v25  ;;  %v468_v20 = vadd.f32 %v467_v18, %v730_v26 }
 0x144   :  { %v308_v21 = vpop.f32.mrf.mxu0  ;;  %v469_v22 = vpop.f32.mrf.mxu1 }
 0x145   :  { %534 = vst [vmem:[#allocation8 + $0x1c0] sm:$0xff] %v307_v19  ;;  %536 = vst [vmem:[#allocation8 + $0x1d0] sm:$0xff] %v468_v20  ;;  %v309_v23 = vadd.f32 %v308_v21, %v732_v27  ;;  %v470_v24 = vadd.f32 %v469_v22, %v734_v28 }
 0x146   :  { %v312_v29 = vpop.f32.mrf.mxu0  ;;  %v473_v0 = vpop.f32.mrf.mxu1 }
 0x147   :  { %535 = vst [vmem:[#allocation8 + $0x1c8] sm:$0xff] %v309_v23  ;;  %537 = vst [vmem:[#allocation8 + $0x1d8] sm:$0xff] %v470_v24  ;;  %v313_v30 = vadd.f32 %v312_v29, %v728_v25  ;;  %v474_v31 = vadd.f32 %v473_v0, %v730_v26 }
 0x148   :  { %v314_v32 = vpop.f32.mrf.mxu0  ;;  %v475_v33 = vpop.f32.mrf.mxu1 }
 0x149   :  { %538 = vst [vmem:[#allocation8 + $0x1e0] sm:$0xff] %v313_v30  ;;  %540 = vst [vmem:[#allocation8 + $0x1f0] sm:$0xff] %v474_v31  ;;  %v315_v34 = vadd.f32 %v314_v32, %v732_v27  ;;  %v476_v35 = vadd.f32 %v475_v33, %v734_v28 }
 0x14b   :  { %539 = vst [vmem:[#allocation8 + $0x1e8] sm:$0xff] %v315_v34  ;;  %541 = vst [vmem:[#allocation8 + $0x1f8] sm:$0xff] %v476_v35 }
 0x14c   :  { %640 = shalt.err (!%p637_p5)
}
 0x14d   :  { %553 = dma.vmem_to_hbm [thread:$0]  %s548_s2, 8192, %s809_s3, [#allocation4], %s656_s15, %s656_s15, %s657_s16  }
 0x14e   :  { %653 = dma.done.wait [#allocation4], 8192  }
 0x14f   :  { %654 = vsyncadd [#allocation4], 4294959104 }
 0x150   :  { %557 = vsyncpa [#allocation3], 1 }
 0x151   :  { %558 = vsyncpa [#allocation6], 1 }
 0x152   :  { %559 = vsyncpa [#allocation4], 1 }

</bundles_post_ra>
